<compile_context>
chip_gen: v5e
topology: v5e:2x2
jax: 0.10.0
libtpu: 0.0.40
codegen_flags: <defaults>
</compile_context>

<pallas_src>
import jax
import jax.numpy as jnp
from jax.experimental import pallas as pl
from jax.experimental.pallas import tpu as pltpu

START_TOKEN_IDX = 0
END_TOKEN_IDX = 1


def _fused_heads_kernel(feat_ref, mask_ref, ids_ref,
                        cw1_ref, cb1_ref, cw2_ref, cb2_ref, cwo_ref, cbo_ref,
                        rw1_ref, rb1_ref, rw2_ref, rb2_ref, rwo_ref, rbo_ref,
                        out_cls_ref, out_reg_ref,
                        num_acc, den_acc):
    """Grid = (B//TB, S//TS).  The sequence axis is the (arbitrary) reduction
    axis: the masked mean-pool is accumulated in VMEM scratch, and the two
    small MLP heads run only on the last sequence step."""
    s = pl.program_id(1)

    @pl.when(s == 0)
    def _init():
        num_acc[...] = jnp.zeros_like(num_acc)
        den_acc[...] = jnp.zeros_like(den_acc)

    feats = feat_ref[...].astype(jnp.float32)        # (TB, TS, H)
    mask = mask_ref[...].astype(jnp.float32)         # (TB, TS)
    ids = ids_ref[...]                               # (TB, TS) int32

    # attention_mask[input_ids == start] = 0 ; attention_mask[input_ids == end] = 0
    drop = jnp.logical_or(ids == START_TOKEN_IDX, ids == END_TOKEN_IDX)
    mask = jnp.where(drop, 0.0, mask)

    # Masked mean-pool accumulation over this sequence tile (H stays on lanes,
    # reduction runs along the sublane-tiled sequence axis).
    num_acc[...] += jnp.sum(feats * mask[:, :, None], axis=1)    # (TB, H)
    den_acc[...] += jnp.sum(mask, axis=1, keepdims=True)         # (TB, 1)

    @pl.when(s == pl.num_programs(1) - 1)
    def _finalize():
        # NOTE: matches PyTorch exactly — divides by zero (NaN) if a row's mask
        # is all-zero after removing start/end tokens.  Exact division (not
        # approx reciprocal) to preserve numerical parity with the reference.
        x = num_acc[...] / den_acc[...]                          # (TB, H)

        def head(w1, b1, w2, b2, wo, bo):
            # dropout == identity (inference); batch_norm disabled by config.
            h = jnp.tanh(jnp.dot(x, w1[...], preferred_element_type=jnp.float32) + b1[...])
            h = jnp.tanh(jnp.dot(h, w2[...], preferred_element_type=jnp.float32) + b2[...])
            return jnp.dot(h, wo[...], preferred_element_type=jnp.float32) + bo[...]

        out_cls_ref[...] = head(cw1_ref, cb1_ref, cw2_ref, cb2_ref,
                                cwo_ref, cbo_ref).astype(out_cls_ref.dtype)
        out_reg_ref[...] = head(rw1_ref, rb1_ref, rw2_ref, rb2_ref,
                                rwo_ref, rbo_ref).astype(out_reg_ref.dtype)


def _choose_tiles(B, S, H, feat_itemsize, stream_budget_bytes=16 << 20):
    """Pick (TB, TS).  TS prefers large multiples of 128 that divide S while
    keeping the double-buffered features/mask/ids stream within a conservative
    budget (v7x has only 64 MiB physical VMEM, shared with resident weights)."""
    TB = 8 if B % 8 == 0 else B
    TS = S
    for ts in (2048, 1024, 512, 256, 128):
        stream = 2 * TB * ts * (H * feat_itemsize + 8)   # feats + mask + ids, x2 buffers
        if S % ts == 0 and stream <= stream_budget_bytes:
            TS = ts
            break
    return TB, TS


def classification_head_mean_pool_sparse(features, attention_mask, input_ids,
                                         cls_params, reg_params):
    """Returns (classification_logits, regression_predictions), each (B, num_labels).

    Both heads operate on the same original mask (the PyTorch module clones the
    mask before the second head; inputs are immutable in JAX anyway)."""
    B, S, H = features.shape
    L = cls_params["wo"].shape[1]
    LP = ((L + 127) // 128) * 128              # lane-dense output width

    # Normalize dtypes once in the wrapper (cheap; keeps kernel paths uniform).
    attention_mask = attention_mask.astype(jnp.float32)
    input_ids = input_ids.astype(jnp.int32)

    feat_itemsize = jnp.dtype(features.dtype).itemsize
    TB, TS = _choose_tiles(B, S, H, feat_itemsize)
    assert B % TB == 0 and S % TS == 0
    grid = (B // TB, S // TS)

    # Pad output projections to the lane-dense width; slice back afterwards.
    def pad_out(p):
        return (jnp.pad(p["wo"], ((0, 0), (0, LP - L))),
                jnp.pad(p["bo"], ((0, 0), (0, LP - L))))
    cwo, cbo = pad_out(cls_params)
    rwo, rbo = pad_out(reg_params)

    def resident(shape):                       # same block every step -> DMA'd once
        return pl.BlockSpec(shape, lambda b, s: (0,) * len(shape))

    in_specs = [
        pl.BlockSpec((TB, TS, H), lambda b, s: (b, s, 0)),   # features
        pl.BlockSpec((TB, TS), lambda b, s: (b, s)),         # attention_mask
        pl.BlockSpec((TB, TS), lambda b, s: (b, s)),         # input_ids
        resident((H, H)), resident((1, H)),                  # cls dense
        resident((H, H)), resident((1, H)),                  # cls dense2
        resident((H, LP)), resident((1, LP)),                # cls out_proj (padded)
        resident((H, H)), resident((1, H)),                  # reg dense
        resident((H, H)), resident((1, H)),                  # reg dense2
        resident((H, LP)), resident((1, LP)),                # reg out_proj (padded)
    ]
    out_specs = (pl.BlockSpec((TB, LP), lambda b, s: (b, 0)),
                 pl.BlockSpec((TB, LP), lambda b, s: (b, 0)))
    out_shape = (jax.ShapeDtypeStruct((B, LP), jnp.float32),
                 jax.ShapeDtypeStruct((B, LP), jnp.float32))

    # Scoped-VMEM budget: double-buffered streams + resident weights + scratch.
    stream_bytes = 2 * TB * TS * (H * feat_itemsize + 4 + 4)
    weight_bytes = 2 * 2 * (2 * H * H + 2 * H + H * LP + LP) * 4
    scratch_bytes = (TB * H + TB) * 4
    out_bytes = 2 * 2 * TB * LP * 4
    vmem_limit = int(min(max(stream_bytes + weight_bytes + scratch_bytes
                             + out_bytes + (2 << 20), 16 << 20), 64 << 20))

    logits_pad, values_pad = pl.pallas_call(
        _fused_heads_kernel,
        out_shape=out_shape,
        grid_spec=pltpu.PrefetchScalarGridSpec(
            num_scalar_prefetch=0,
            grid=grid,
            in_specs=in_specs,
            out_specs=out_specs,
            scratch_shapes=[pltpu.VMEM((TB, H), jnp.float32),   # pooled-sum accumulator
                            pltpu.VMEM((TB, 1), jnp.float32)],  # mask-count accumulator
        ),
        compiler_params=pltpu.CompilerParams(
            dimension_semantics=("parallel", "arbitrary"),
            vmem_limit_bytes=vmem_limit),
    )(features, attention_mask, input_ids,
      cls_params["w1"], cls_params["b1"], cls_params["w2"], cls_params["b2"], cwo, cbo,
      reg_params["w1"], reg_params["b1"], reg_params["w2"], reg_params["b2"], rwo, rbo)

    return logits_pad[:, :L], values_pad[:, :L]


def _init_head_params(key, hidden, num_labels):
    k1, k2, k3, k4, k5, k6 = jax.random.split(key, 6)
    scale = 1.0 / jnp.sqrt(hidden)
    return {
        "w1": jax.random.normal(k1, (hidden, hidden), jnp.float32) * scale,
        "b1": jax.random.normal(k2, (1, hidden), jnp.float32) * 0.01,
        "w2": jax.random.normal(k3, (hidden, hidden), jnp.float32) * scale,
        "b2": jax.random.normal(k4, (1, hidden), jnp.float32) * 0.01,
        "wo": jax.random.normal(k5, (hidden, num_labels), jnp.float32) * scale,
        "bo": jax.random.normal(k6, (1, num_labels), jnp.float32) * 0.01,
    }


def _reference_head(features, attention_mask, input_ids, p):
    mask = jnp.where(
        (input_ids == START_TOKEN_IDX) | (input_ids == END_TOKEN_IDX),
        0.0, attention_mask)
    x = jnp.sum(features * mask[:, :, None], axis=1) / jnp.sum(mask, axis=1, keepdims=True)
    x = jnp.tanh(x @ p["w1"] + p["b1"])
    x = jnp.tanh(x @ p["w2"] + p["b2"])
    return x @ p["wo"] + p["bo"]


if __name__ == "__main__":
    B, S, H, L = 2, 8, 32, 8  # batch, seq, hidden_size, num_labels

    key = jax.random.PRNGKey(0)
    kf, kids, kc, kr = jax.random.split(key, 4)

    features = jax.random.normal(kf, (B, S, H), jnp.float32)
    # Each sequence: start token (0), middle tokens, end token (1), padding.
    input_ids = jnp.array(
        [[0, 5, 7, 3, 9, 2, 1, 4],
         [0, 6, 8, 4, 1, 3, 3, 3]], dtype=jnp.int32)
    attention_mask = jnp.array(
        [[1, 1, 1, 1, 1, 1, 1, 0],
         [1, 1, 1, 1, 1, 0, 0, 0]], dtype=jnp.float32)

    cls_params = _init_head_params(kc, H, L)
    reg_params = _init_head_params(kr, H, L)

    logits, values = classification_head_mean_pool_sparse(
        features, attention_mask, input_ids, cls_params, reg_params)
    jax.block_until_ready((logits, values))

    ref_logits = _reference_head(features, attention_mask, input_ids, cls_params)
    ref_values = _reference_head(features, attention_mask, input_ids, reg_params)
    assert logits.shape == (B, L) and values.shape == (B, L)
    assert jnp.allclose(logits, ref_logits, atol=1e-5, rtol=1e-5)
    assert jnp.allclose(values, ref_values, atol=1e-5, rtol=1e-5)

    print("KERNEL_OK")
</pallas_src>

<mosaic_0001>
module attributes {stable_mosaic.version = 11 : i64} {
  func.func @_fused_heads_kernel(%arg0: i32, %arg1: i32, %arg2: memref<2x8x32xf32, #tpu.memory_space<vmem>>, %arg3: memref<2x8xf32, #tpu.memory_space<vmem>>, %arg4: memref<2x8xi32, #tpu.memory_space<vmem>>, %arg5: memref<32x32xf32, #tpu.memory_space<vmem>>, %arg6: memref<1x32xf32, #tpu.memory_space<vmem>>, %arg7: memref<32x32xf32, #tpu.memory_space<vmem>>, %arg8: memref<1x32xf32, #tpu.memory_space<vmem>>, %arg9: memref<32x128xf32, #tpu.memory_space<vmem>>, %arg10: memref<1x128xf32, #tpu.memory_space<vmem>>, %arg11: memref<32x32xf32, #tpu.memory_space<vmem>>, %arg12: memref<1x32xf32, #tpu.memory_space<vmem>>, %arg13: memref<32x32xf32, #tpu.memory_space<vmem>>, %arg14: memref<1x32xf32, #tpu.memory_space<vmem>>, %arg15: memref<32x128xf32, #tpu.memory_space<vmem>>, %arg16: memref<1x128xf32, #tpu.memory_space<vmem>>, %arg17: memref<2x128xf32, #tpu.memory_space<vmem>>, %arg18: memref<2x128xf32, #tpu.memory_space<vmem>>, %arg19: memref<2x32xf32, #tpu.memory_space<vmem>>, %arg20: memref<2x1xf32, #tpu.memory_space<vmem>>) attributes {dimension_semantics = [#tpu.dimension_semantics<parallel>, #tpu.dimension_semantics<arbitrary>], iteration_bounds = array<i64: 1, 1>, scalar_prefetch = 0 : i64, scratch_operands = 2 : i64, tpu.core_type = #tpu.core_type<tc>, window_params = [{transform_indices = @transform_0, window_bounds = array<i64: 2, 8, 32>}, {transform_indices = @transform_1, window_bounds = array<i64: 2, 8>}, {transform_indices = @transform_2, window_bounds = array<i64: 2, 8>}, {pipeline_mode = #tpu.pipeline_mode<synchronous>, transform_indices = @transform_3, window_bounds = array<i64: 32, 32>}, {pipeline_mode = #tpu.pipeline_mode<synchronous>, transform_indices = @transform_4, window_bounds = array<i64: 1, 32>}, {pipeline_mode = #tpu.pipeline_mode<synchronous>, transform_indices = @transform_5, window_bounds = array<i64: 32, 32>}, {pipeline_mode = #tpu.pipeline_mode<synchronous>, transform_indices = @transform_6, window_bounds = array<i64: 1, 32>}, {pipeline_mode = #tpu.pipeline_mode<synchronous>, transform_indices = @transform_7, window_bounds = array<i64: 32, 128>}, {pipeline_mode = #tpu.pipeline_mode<synchronous>, transform_indices = @transform_8, window_bounds = array<i64: 1, 128>}, {pipeline_mode = #tpu.pipeline_mode<synchronous>, transform_indices = @transform_9, window_bounds = array<i64: 32, 32>}, {pipeline_mode = #tpu.pipeline_mode<synchronous>, transform_indices = @transform_10, window_bounds = array<i64: 1, 32>}, {pipeline_mode = #tpu.pipeline_mode<synchronous>, transform_indices = @transform_11, window_bounds = array<i64: 32, 32>}, {pipeline_mode = #tpu.pipeline_mode<synchronous>, transform_indices = @transform_12, window_bounds = array<i64: 1, 32>}, {pipeline_mode = #tpu.pipeline_mode<synchronous>, transform_indices = @transform_13, window_bounds = array<i64: 32, 128>}, {pipeline_mode = #tpu.pipeline_mode<synchronous>, transform_indices = @transform_14, window_bounds = array<i64: 1, 128>}, {transform_indices = @transform_15, window_bounds = array<i64: 2, 128>}, {transform_indices = @transform_16, window_bounds = array<i64: 2, 128>}]} {
    %c0_i32 = arith.constant 0 : i32
    %0 = arith.cmpi eq, %arg1, %c0_i32 : i32
    %1 = arith.extui %0 : i1 to i32
    %c0_i32_0 = arith.constant 0 : i32
    %2 = arith.cmpi ne, %1, %c0_i32_0 : i32
    scf.if %2 {
      %cst_20 = arith.constant 0.000000e+00 : f32
      %28 = vector.broadcast %cst_20 : f32 to vector<2x32xf32>
      %c0_21 = arith.constant 0 : index
      %c0_22 = arith.constant 0 : index
      %29 = vector.load %arg19[%c0_21, %c0_22] : memref<2x32xf32, #tpu.memory_space<vmem>>, vector<2x32xf32>
      tpu.vector_store %arg19[%c0_21, %c0_22], %28 {strides = array<i32>} : memref<2x32xf32, #tpu.memory_space<vmem>>, vector<2x32xf32>,
      %cst_23 = arith.constant 0.000000e+00 : f32
      %30 = vector.broadcast %cst_23 : f32 to vector<2x1xf32>
      %c0_24 = arith.constant 0 : index
      %c0_25 = arith.constant 0 : index
      %31 = vector.load %arg20[%c0_24, %c0_25] : memref<2x1xf32, #tpu.memory_space<vmem>>, vector<2x1xf32>
      tpu.vector_store %arg20[%c0_24, %c0_25], %30 {strides = array<i32>} : memref<2x1xf32, #tpu.memory_space<vmem>>, vector<2x1xf32>,
    } else {
    }
    %c0 = arith.constant 0 : index
    %c0_1 = arith.constant 0 : index
    %c0_2 = arith.constant 0 : index
    %3 = vector.load %arg2[%c0, %c0_1, %c0_2] : memref<2x8x32xf32, #tpu.memory_space<vmem>>, vector<2x8x32xf32>
    %c0_3 = arith.constant 0 : index
    %c0_4 = arith.constant 0 : index
    %4 = vector.load %arg3[%c0_3, %c0_4] : memref<2x8xf32, #tpu.memory_space<vmem>>, vector<2x8xf32>
    %c0_5 = arith.constant 0 : index
    %c0_6 = arith.constant 0 : index
    %5 = vector.load %arg4[%c0_5, %c0_6] : memref<2x8xi32, #tpu.memory_space<vmem>>, vector<2x8xi32>
    %c0_i32_7 = arith.constant 0 : i32
    %6 = vector.broadcast %c0_i32_7 : i32 to vector<2x8xi32>
    %7 = arith.cmpi eq, %5, %6 : vector<2x8xi32>
    %c1_i32 = arith.constant 1 : i32
    %8 = vector.broadcast %c1_i32 : i32 to vector<2x8xi32>
    %9 = arith.cmpi eq, %5, %8 : vector<2x8xi32>
    %10 = arith.ori %7, %9 : vector<2x8xi1>
    %cst = arith.constant 0.000000e+00 : f32
    %11 = vector.broadcast %cst : f32 to vector<2x8xf32>
    %12 = arith.select %10, %11, %4 : vector<2x8xi1>, vector<2x8xf32>
    %c0_8 = arith.constant 0 : index
    %c0_9 = arith.constant 0 : index
    %13 = vector.load %arg19[%c0_8, %c0_9] : memref<2x32xf32, #tpu.memory_space<vmem>>, vector<2x32xf32>
    %14 = vector.shape_cast %12 : vector<2x8xf32> to vector<2x8x1xf32>
    %15 = vector.broadcast %14 : vector<2x8x1xf32> to vector<2x8x32xf32>
    %16 = arith.mulf %3, %15 : vector<2x8x32xf32>
    %cst_10 = arith.constant dense<0.000000e+00> : vector<2x32xf32>
    %17 = vector.multi_reduction <add>, %16, %cst_10 [1] : vector<2x8x32xf32> to vector<2x32xf32>
    %18 = arith.addf %13, %17 : vector<2x32xf32>
    %c0_11 = arith.constant 0 : index
    %c0_12 = arith.constant 0 : index
    %19 = vector.load %arg19[%c0_11, %c0_12] : memref<2x32xf32, #tpu.memory_space<vmem>>, vector<2x32xf32>
    tpu.vector_store %arg19[%c0_11, %c0_12], %18 {strides = array<i32>} : memref<2x32xf32, #tpu.memory_space<vmem>>, vector<2x32xf32>,
    %c0_13 = arith.constant 0 : index
    %c0_14 = arith.constant 0 : index
    %20 = vector.load %arg20[%c0_13, %c0_14] : memref<2x1xf32, #tpu.memory_space<vmem>>, vector<2x1xf32>
    %cst_15 = arith.constant dense<0.000000e+00> : vector<2xf32>
    %21 = vector.multi_reduction <add>, %12, %cst_15 [1] : vector<2x8xf32> to vector<2xf32>
    %22 = vector.shape_cast %21 : vector<2xf32> to vector<2x1xf32>
    %23 = arith.addf %20, %22 : vector<2x1xf32>
    %c0_16 = arith.constant 0 : index
    %c0_17 = arith.constant 0 : index
    %24 = vector.load %arg20[%c0_16, %c0_17] : memref<2x1xf32, #tpu.memory_space<vmem>>, vector<2x1xf32>
    tpu.vector_store %arg20[%c0_16, %c0_17], %23 {strides = array<i32>} : memref<2x1xf32, #tpu.memory_space<vmem>>, vector<2x1xf32>,
    %c0_i32_18 = arith.constant 0 : i32
    %25 = arith.cmpi eq, %arg1, %c0_i32_18 : i32
    %26 = arith.extui %25 : i1 to i32
    %c0_i32_19 = arith.constant 0 : i32
    %27 = arith.cmpi ne, %26, %c0_i32_19 : i32
    scf.if %27 {
      %c0_20 = arith.constant 0 : index
      %c0_21 = arith.constant 0 : index
      %28 = vector.load %arg19[%c0_20, %c0_21] : memref<2x32xf32, #tpu.memory_space<vmem>>, vector<2x32xf32>
      %c0_22 = arith.constant 0 : index
      %c0_23 = arith.constant 0 : index
      %29 = vector.load %arg20[%c0_22, %c0_23] : memref<2x1xf32, #tpu.memory_space<vmem>>, vector<2x1xf32>
      %30 = vector.broadcast %29 : vector<2x1xf32> to vector<2x32xf32>
      %31 = arith.divf %28, %30 : vector<2x32xf32>
      %c0_24 = arith.constant 0 : index
      %c0_25 = arith.constant 0 : index
      %32 = vector.load %arg5[%c0_24, %c0_25] : memref<32x32xf32, #tpu.memory_space<vmem>>, vector<32x32xf32>
      %cst_26 = arith.constant dense<0.000000e+00> : vector<2x32xf32>
      %33 = tpu.matmul %31, %32, %cst_26 {dimension_numbers = #tpu.dot_dimension_numbers<[1], [0], [0], [1], [0, 0, 1, 1], [], []>} : vector<2x32xf32>, vector<32x32xf32>, vector<2x32xf32> -> vector<2x32xf32>
      %c0_27 = arith.constant 0 : index
      %c0_28 = arith.constant 0 : index
      %34 = vector.load %arg6[%c0_27, %c0_28] : memref<1x32xf32, #tpu.memory_space<vmem>>, vector<1x32xf32>
      %35 = vector.broadcast %34 : vector<1x32xf32> to vector<2x32xf32>
      %36 = arith.addf %33, %35 : vector<2x32xf32>
      %37 = math.tanh %36 : vector<2x32xf32>
      %c0_29 = arith.constant 0 : index
      %c0_30 = arith.constant 0 : index
      %38 = vector.load %arg7[%c0_29, %c0_30] : memref<32x32xf32, #tpu.memory_space<vmem>>, vector<32x32xf32>
      %cst_31 = arith.constant dense<0.000000e+00> : vector<2x32xf32>
      %39 = tpu.matmul %37, %38, %cst_31 {dimension_numbers = #tpu.dot_dimension_numbers<[1], [0], [0], [1], [0, 0, 1, 1], [], []>} : vector<2x32xf32>, vector<32x32xf32>, vector<2x32xf32> -> vector<2x32xf32>
      %c0_32 = arith.constant 0 : index
      %c0_33 = arith.constant 0 : index
      %40 = vector.load %arg8[%c0_32, %c0_33] : memref<1x32xf32, #tpu.memory_space<vmem>>, vector<1x32xf32>
      %41 = vector.broadcast %40 : vector<1x32xf32> to vector<2x32xf32>
      %42 = arith.addf %39, %41 : vector<2x32xf32>
      %43 = math.tanh %42 : vector<2x32xf32>
      %c0_34 = arith.constant 0 : index
      %c0_35 = arith.constant 0 : index
      %44 = vector.load %arg9[%c0_34, %c0_35] : memref<32x128xf32, #tpu.memory_space<vmem>>, vector<32x128xf32>
      %cst_36 = arith.constant dense<0.000000e+00> : vector<2x128xf32>
      %45 = tpu.matmul %43, %44, %cst_36 {dimension_numbers = #tpu.dot_dimension_numbers<[1], [0], [0], [1], [0, 0, 1, 1], [], []>} : vector<2x32xf32>, vector<32x128xf32>, vector<2x128xf32> -> vector<2x128xf32>
      %c0_37 = arith.constant 0 : index
      %c0_38 = arith.constant 0 : index
      %46 = vector.load %arg10[%c0_37, %c0_38] : memref<1x128xf32, #tpu.memory_space<vmem>>, vector<1x128xf32>
      %47 = vector.broadcast %46 : vector<1x128xf32> to vector<2x128xf32>
      %48 = arith.addf %45, %47 : vector<2x128xf32>
      %c0_39 = arith.constant 0 : index
      %c0_40 = arith.constant 0 : index
      %49 = vector.load %arg17[%c0_39, %c0_40] : memref<2x128xf32, #tpu.memory_space<vmem>>, vector<2x128xf32>
      tpu.vector_store %arg17[%c0_39, %c0_40], %48 {strides = array<i32>} : memref<2x128xf32, #tpu.memory_space<vmem>>, vector<2x128xf32>,
      %c0_41 = arith.constant 0 : index
      %c0_42 = arith.constant 0 : index
      %50 = vector.load %arg11[%c0_41, %c0_42] : memref<32x32xf32, #tpu.memory_space<vmem>>, vector<32x32xf32>
      %cst_43 = arith.constant dense<0.000000e+00> : vector<2x32xf32>
      %51 = tpu.matmul %31, %50, %cst_43 {dimension_numbers = #tpu.dot_dimension_numbers<[1], [0], [0], [1], [0, 0, 1, 1], [], []>} : vector<2x32xf32>, vector<32x32xf32>, vector<2x32xf32> -> vector<2x32xf32>
      %c0_44 = arith.constant 0 : index
      %c0_45 = arith.constant 0 : index
      %52 = vector.load %arg12[%c0_44, %c0_45] : memref<1x32xf32, #tpu.memory_space<vmem>>, vector<1x32xf32>
      %53 = vector.broadcast %52 : vector<1x32xf32> to vector<2x32xf32>
      %54 = arith.addf %51, %53 : vector<2x32xf32>
      %55 = math.tanh %54 : vector<2x32xf32>
      %c0_46 = arith.constant 0 : index
      %c0_47 = arith.constant 0 : index
      %56 = vector.load %arg13[%c0_46, %c0_47] : memref<32x32xf32, #tpu.memory_space<vmem>>, vector<32x32xf32>
      %cst_48 = arith.constant dense<0.000000e+00> : vector<2x32xf32>
      %57 = tpu.matmul %55, %56, %cst_48 {dimension_numbers = #tpu.dot_dimension_numbers<[1], [0], [0], [1], [0, 0, 1, 1], [], []>} : vector<2x32xf32>, vector<32x32xf32>, vector<2x32xf32> -> vector<2x32xf32>
      %c0_49 = arith.constant 0 : index
      %c0_50 = arith.constant 0 : index
      %58 = vector.load %arg14[%c0_49, %c0_50] : memref<1x32xf32, #tpu.memory_space<vmem>>, vector<1x32xf32>
      %59 = vector.broadcast %58 : vector<1x32xf32> to vector<2x32xf32>
      %60 = arith.addf %57, %59 : vector<2x32xf32>
      %61 = math.tanh %60 : vector<2x32xf32>
      %c0_51 = arith.constant 0 : index
      %c0_52 = arith.constant 0 : index
      %62 = vector.load %arg15[%c0_51, %c0_52] : memref<32x128xf32, #tpu.memory_space<vmem>>, vector<32x128xf32>
      %cst_53 = arith.constant dense<0.000000e+00> : vector<2x128xf32>
      %63 = tpu.matmul %61, %62, %cst_53 {dimension_numbers = #tpu.dot_dimension_numbers<[1], [0], [0], [1], [0, 0, 1, 1], [], []>} : vector<2x32xf32>, vector<32x128xf32>, vector<2x128xf32> -> vector<2x128xf32>
      %c0_54 = arith.constant 0 : index
      %c0_55 = arith.constant 0 : index
      %64 = vector.load %arg16[%c0_54, %c0_55] : memref<1x128xf32, #tpu.memory_space<vmem>>, vector<1x128xf32>
      %65 = vector.broadcast %64 : vector<1x128xf32> to vector<2x128xf32>
      %66 = arith.addf %63, %65 : vector<2x128xf32>
      %c0_56 = arith.constant 0 : index
      %c0_57 = arith.constant 0 : index
      %67 = vector.load %arg18[%c0_56, %c0_57] : memref<2x128xf32, #tpu.memory_space<vmem>>, vector<2x128xf32>
      tpu.vector_store %arg18[%c0_56, %c0_57], %66 {strides = array<i32>} : memref<2x128xf32, #tpu.memory_space<vmem>>, vector<2x128xf32>,
    } else {
    }
    return
  }
  func.func @transform_0(%arg0: i32, %arg1: i32) -> (i32, i32, i32) {
    %c0_i32 = arith.constant 0 : i32
    %c0_i32_0 = arith.constant 0 : i32
    return %arg0, %arg1, %c0_i32 : i32, i32, i32
  }
  func.func @transform_1(%arg0: i32, %arg1: i32) -> (i32, i32) {
    %c0_i32 = arith.constant 0 : i32
    return %arg0, %arg1 : i32, i32
  }
  func.func @transform_2(%arg0: i32, %arg1: i32) -> (i32, i32) {
    %c0_i32 = arith.constant 0 : i32
    return %arg0, %arg1 : i32, i32
  }
  func.func @transform_3(%arg0: i32, %arg1: i32) -> (i32, i32) {
    %c0_i32 = arith.constant 0 : i32
    %c0_i32_0 = arith.constant 0 : i32
    %c0_i32_1 = arith.constant 0 : i32
    return %c0_i32, %c0_i32_0 : i32, i32
  }
  func.func @transform_4(%arg0: i32, %arg1: i32) -> (i32, i32) {
    %c0_i32 = arith.constant 0 : i32
    %c0_i32_0 = arith.constant 0 : i32
    %c0_i32_1 = arith.constant 0 : i32
    return %c0_i32, %c0_i32_0 : i32, i32
  }
  func.func @transform_5(%arg0: i32, %arg1: i32) -> (i32, i32) {
    %c0_i32 = arith.constant 0 : i32
    %c0_i32_0 = arith.constant 0 : i32
    %c0_i32_1 = arith.constant 0 : i32
    return %c0_i32, %c0_i32_0 : i32, i32
  }
  func.func @transform_6(%arg0: i32, %arg1: i32) -> (i32, i32) {
    %c0_i32 = arith.constant 0 : i32
    %c0_i32_0 = arith.constant 0 : i32
    %c0_i32_1 = arith.constant 0 : i32
    return %c0_i32, %c0_i32_0 : i32, i32
  }
  func.func @transform_7(%arg0: i32, %arg1: i32) -> (i32, i32) {
    %c0_i32 = arith.constant 0 : i32
    %c0_i32_0 = arith.constant 0 : i32
    %c0_i32_1 = arith.constant 0 : i32
    return %c0_i32, %c0_i32_0 : i32, i32
  }
  func.func @transform_8(%arg0: i32, %arg1: i32) -> (i32, i32) {
    %c0_i32 = arith.constant 0 : i32
    %c0_i32_0 = arith.constant 0 : i32
    %c0_i32_1 = arith.constant 0 : i32
    return %c0_i32, %c0_i32_0 : i32, i32
  }
  func.func @transform_9(%arg0: i32, %arg1: i32) -> (i32, i32) {
    %c0_i32 = arith.constant 0 : i32
    %c0_i32_0 = arith.constant 0 : i32
    %c0_i32_1 = arith.constant 0 : i32
    return %c0_i32, %c0_i32_0 : i32, i32
  }
  func.func @transform_10(%arg0: i32, %arg1: i32) -> (i32, i32) {
    %c0_i32 = arith.constant 0 : i32
    %c0_i32_0 = arith.constant 0 : i32
    %c0_i32_1 = arith.constant 0 : i32
    return %c0_i32, %c0_i32_0 : i32, i32
  }
  func.func @transform_11(%arg0: i32, %arg1: i32) -> (i32, i32) {
    %c0_i32 = arith.constant 0 : i32
    %c0_i32_0 = arith.constant 0 : i32
    %c0_i32_1 = arith.constant 0 : i32
    return %c0_i32, %c0_i32_0 : i32, i32
  }
  func.func @transform_12(%arg0: i32, %arg1: i32) -> (i32, i32) {
    %c0_i32 = arith.constant 0 : i32
    %c0_i32_0 = arith.constant 0 : i32
    %c0_i32_1 = arith.constant 0 : i32
    return %c0_i32, %c0_i32_0 : i32, i32
  }
  func.func @transform_13(%arg0: i32, %arg1: i32) -> (i32, i32) {
    %c0_i32 = arith.constant 0 : i32
    %c0_i32_0 = arith.constant 0 : i32
    %c0_i32_1 = arith.constant 0 : i32
    return %c0_i32, %c0_i32_0 : i32, i32
  }
  func.func @transform_14(%arg0: i32, %arg1: i32) -> (i32, i32) {
    %c0_i32 = arith.constant 0 : i32
    %c0_i32_0 = arith.constant 0 : i32
    %c0_i32_1 = arith.constant 0 : i32
    return %c0_i32, %c0_i32_0 : i32, i32
  }
  func.func @transform_15(%arg0: i32, %arg1: i32) -> (i32, i32) {
    %c0_i32 = arith.constant 0 : i32
    %c0_i32_0 = arith.constant 0 : i32
    return %arg0, %c0_i32 : i32, i32
  }
  func.func @transform_16(%arg0: i32, %arg1: i32) -> (i32, i32) {
    %c0_i32 = arith.constant 0 : i32
    %c0_i32_0 = arith.constant 0 : i32
    return %arg0, %c0_i32 : i32, i32
  }
}

</mosaic_0001>

<bundles_post_ra>
// kernel: tpu_custom_call.1
= control target key start
LH: loop header
LB: loop body
LE: loop exit
PB: predicated region body
PF: predicated region fallthrough
CT: control target
= control target key end

     0   :  { %s1008_s0 = inlined_call_operand.hbm [shape: f32[2,8,32], index: 0, kind: input, shape index: {}]   ;;  %s1009_s1 = inlined_call_operand.hbm [shape: f32[2,8], index: 1, kind: input, shape index: {}]   ;;  %s1010_s2 = inlined_call_operand.hbm [shape: s32[2,8], index: 2, kind: input, shape index: {}]   ;;  %s1011_s3 = inlined_call_operand.hbm [shape: f32[32,32], index: 3, kind: input, shape index: {}]   ;;  %s1012_s4 = inlined_call_operand.vmem [shape: f32[1,32], index: 4, kind: input, shape index: {}]   ;;  %s1013_s5 = inlined_call_operand.hbm [shape: f32[32,32], index: 5, kind: input, shape index: {}]   ;;  %s1014_s6 = inlined_call_operand.vmem [shape: f32[1,32], index: 6, kind: input, shape index: {}]   ;;  %s1015_s7 = inlined_call_operand.hbm [shape: f32[32,128], index: 7, kind: input, shape index: {}]   ;;  %s1016_s8 = inlined_call_operand.vmem [shape: f32[1,128], index: 8, kind: input, shape index: {}]   ;;  %s1017_s9 = inlined_call_operand.hbm [shape: f32[32,32], index: 9, kind: input, shape index: {}]   ;;  %s1018_s10 = inlined_call_operand.vmem [shape: f32[1,32], index: 10, kind: input, shape index: {}]   ;;  %s1019_s11 = inlined_call_operand.hbm [shape: f32[32,32], index: 11, kind: input, shape index: {}]   ;;  %s1020_s12 = inlined_call_operand.vmem [shape: f32[1,32], index: 12, kind: input, shape index: {}]   ;;  %s1021_s13 = inlined_call_operand.hbm [shape: f32[32,128], index: 13, kind: input, shape index: {}]   ;;  %s1022_s14 = inlined_call_operand.vmem [shape: f32[1,128], index: 14, kind: input, shape index: {}]   ;;  %s1023_s15 = inlined_call_operand.hbm [shape: f32[2,128], index: 15, kind: output, shape index: {0}]   ;;  %s1024_s16 = inlined_call_operand.hbm [shape: f32[2,128], index: 16, kind: output, shape index: {1}]  }
   0x1   :  { %1025 = sst [smem:[#allocation29_spill]] %s1008_s0 }
   0x2   :  { %22 = vsyncpa [#allocation5], 0 }
   0x3   :  { %23 = vsyncpa [#allocation8], 0 }
   0x4   :  { %24 = vsyncpa [#allocation11], 0 }
   0x5   :  { %25 = vsyncpa [#allocation14], 0 }
   0x6   :  { %26 = vsyncpa [#allocation17], 0 }
   0x7   :  { %27 = vsyncpa [#allocation6], 0  ;;  %s47_s23 = sshll.u32 %s1009_s1, 4  ;;  %s48_s23 = int_to_ptr.hbm [resolvable:$true] %s47_s23 }
   0x8   :  { %28 = vsyncpa [#allocation21], 0  ;;  %s824_s24 = smov [#allocation7]   ;;  %s68_s28 = sshll.u32 %s1011_s3, 4  ;;  %s69_s28 = int_to_ptr.hbm [resolvable:$true] %s68_s28 }
   0x9   :  { %s49_s25 = sshll.u32 %s824_s24, 4  ;;  %s825_s29 = smov [#allocation10]   ;;  %s50_s25 = int_to_ptr.vmem [resolvable:$true] %s49_s25 }
   0xa   :  { %52 = dma.hbm_to_vmem [thread:$0]  %s48_s23, 32, %s50_s25, [#allocation8]  }
   0xb   :  { %s70_s30 = sshll.u32 %s825_s29, 4  ;;  %s98_s18 = sshll.u32 %s1015_s7, 4  ;;  %s71_s30 = int_to_ptr.vmem [resolvable:$true] %s70_s30  ;;  %s99_s18 = int_to_ptr.hbm [resolvable:$true] %s98_s18 }
   0xc   :  { %s826_s1 = smov 128   ;;  %s827_s19 = smov 8  }
   0xd   :  { %76 = dma.hbm_to_vmem [thread:$0]  %s69_s28, 512, %s71_s30, [#allocation11], %s826_s1, %s826_s1, %s827_s19  }
   0xe   :  { %s128_s22 = sshll.u32 %s1019_s11, 4  ;;  %s828_s3 = smov [#allocation13]   ;;  %s129_s22 = int_to_ptr.hbm [resolvable:$true] %s128_s22 }
   0xf   :  { %s100_s23 = sshll.u32 %s828_s3, 4  ;;  %s829_s7 = smov [#allocation16]   ;;  %s101_s23 = int_to_ptr.vmem [resolvable:$true] %s100_s23 }
  0x10   :  { %106 = dma.hbm_to_vmem [thread:$0]  %s99_s18, 512, %s101_s23, [#allocation14], %s826_s1, %s826_s1, %s827_s19  }
  0x11   :  { %s130_s24 = sshll.u32 %s829_s7, 4  ;;  %s1026_s27 = sld [smem:[#allocation29_spill]]  ;;  %s131_s24 = int_to_ptr.vmem [resolvable:$true] %s130_s24 }
  0x12   :  { %136 = dma.hbm_to_vmem [thread:$0]  %s129_s22, 512, %s131_s24, [#allocation17], %s826_s1, %s826_s1, %s827_s19  }
  0x13   :  { %s58_s30 = sshll.u32 %s1010_s2, 4  ;;  %s830_s0 = smov [#allocation4]   ;;  %s59_s30 = int_to_ptr.hbm [resolvable:$true] %s58_s30 }
  0x14   :  { %s35_s17 = sshll.u32 %s830_s0, 4  ;;  %s831_s18 = smov [#allocation9]   ;;  %s36_s17 = int_to_ptr.vmem [resolvable:$true] %s35_s17 }
  0x15   :  { %s60_s20 = sshll.u32 %s831_s18, 4  ;;  %s83_s23 = sshll.u32 %s1013_s5, 4  ;;  %s61_s20 = int_to_ptr.vmem [resolvable:$true] %s60_s20  ;;  %s84_s23 = int_to_ptr.hbm [resolvable:$true] %s83_s23 }
  0x16   :  { %63 = dma.hbm_to_vmem [thread:$0]  %s59_s30, 32, %s61_s20, [#allocation8]  }
  0x17   :  { %s33_s29 = sshll.u32 %s1026_s27, 4  ;;  %s113_s2 = sshll.u32 %s1017_s9, 4  ;;  %s34_s29 = int_to_ptr.hbm [resolvable:$true] %s33_s29  ;;  %s114_s2 = int_to_ptr.hbm [resolvable:$true] %s113_s2 }
  0x18   :  { %41 = dma.hbm_to_vmem [thread:$0]  %s34_s29, 256, %s36_s17, [#allocation5], %s826_s1, %s826_s1, %s827_s19  }
  0x19   :  { %s832_s24 = smov [#allocation12]   ;;  %s833_s26 = smov [#allocation15]  }
  0x1a   :  { %s85_s25 = sshll.u32 %s832_s24, 4  ;;  %s115_s27 = sshll.u32 %s833_s26, 4  ;;  %s86_s25 = int_to_ptr.vmem [resolvable:$true] %s85_s25  ;;  %s116_s27 = int_to_ptr.vmem [resolvable:$true] %s115_s27 }
  0x1b   :  { %91 = dma.hbm_to_vmem [thread:$0]  %s84_s23, 512, %s86_s25, [#allocation11], %s826_s1, %s826_s1, %s827_s19  }
  0x1c   :  { %s143_s5 = sshll.u32 %s1021_s13, 4  ;;  %s834_s9 = smov [#allocation18]   ;;  %s144_s5 = int_to_ptr.hbm [resolvable:$true] %s143_s5 }
  0x1d   :  { %121 = dma.hbm_to_vmem [thread:$0]  %s114_s2, 512, %s116_s27, [#allocation14], %s826_s1, %s826_s1, %s827_s19  }
  0x1e   :  { %s145_s28 = sshll.u32 %s834_s9, 4  ;;  %s146_s28 = int_to_ptr.vmem [resolvable:$true] %s145_s28 }
  0x1f   :  { %151 = dma.hbm_to_vmem [thread:$0]  %s144_s5, 512, %s146_s28, [#allocation17], %s826_s1, %s826_s1, %s827_s19  }
  0x20   :  { %810 = dma.done.wait [#allocation5], 256  }
  0x21   :  { %811 = vsyncadd [#allocation5], 4294967040 }
  0x22   :  { %812 = dma.done.wait [#allocation8], 64  }
  0x23   :  { %813 = vsyncadd [#allocation8], 4294967232 }
  0x24   :  { %814 = dma.done.wait [#allocation11], 1024  }
  0x25   :  { %815 = vsyncadd [#allocation11], 4294966272 }
  0x26   :  { %816 = dma.done.wait [#allocation14], 1024  }
  0x27   :  { %817 = vsyncadd [#allocation14], 4294966272 }
  0x28   :  { %818 = dma.done.wait [#allocation17], 1024  }
  0x29   :  { %819 = vsyncadd [#allocation17], 4294966272  ;;  %v208_v0 = vlaneseq  ;;  %vm194_vm0 = vcmask 254976   ;;  %vm196_vm1 = vcmask 1024   ;;  %v835_v1 = vmov 0.0   ;;  %v199_v14 = vld [vmem:[#allocation4 + $0x8] sm:$0xff] }
  0x2a   :  { %195 = vst.msk [vmem:[#allocation2] sm:$0x3] %vm194_vm0, %v835_v1  ;;  %vm247_vm2 = vcmask 58368   ;;  %v200_v3 = vld [vmem:[#allocation7] sm:$0x3]  ;;  %v836_v9 = vmov 0  }
  0x2b   :  { %v209_v2 = vshrl.u32 %v208_v0, 7  ;;  %197 = vst.msk [vmem:[#allocation3] sm:$0x3] %vm196_vm1, %v835_v1  ;;  %v201_v4 = vld [vmem:[#allocation9] sm:$0x3]  ;;  %vm223_vm6 = vcmask 261120  }
  0x2c   :  { %vm202_vm3 = vcmp.eq.s32.totalorder %v201_v4, 0  ;;  %vm203_vm4 = vcmp.eq.s32.totalorder %v201_v4, 1  ;;  %v198_v20 = vld [vmem:[#allocation4] sm:$0xff]  ;;  %vm240_vm7 = vcmask 1041409   ;;  %v282_v37 = vld [vmem:[#allocation10 + $0x18] sm:$0xff]  ;;  %v279_v43 = vld [vmem:[#allocation10] sm:$0xff] }
  0x2d   :  { %527 = vset.pattern.permute.xlu1 %v209_v2  ;;  %526 = vset.pattern.permute.xlu0 %v209_v2  ;;  %vm204_vm5 = vmor %vm202_vm3, %vm203_vm4  ;;  %v378_v38 = vld [vmem:[#allocation15 + $0x18] sm:$0xff]  ;;  %v281_v39 = vld [vmem:[#allocation10 + $0x10] sm:$0xff]  ;;  %s837_s3 = smov [#allocation19]   ;;  %s475_s7 = sshll.u32 %s1023_s15, 4  ;;  %s476_s7 = int_to_ptr.hbm [resolvable:$true] %s475_s7 }
  0x2e   :  { %v205_v5 = vsel %vm204_vm5, 0.0, %v200_v3  ;;  %302 = vmatpush.msra.mxu0 %v282_v37  ;;  %395 = vmatpush.msra.mxu3 %v378_v38  ;;  %v377_v40 = vld [vmem:[#allocation15 + $0x10] sm:$0xff]  ;;  %v280_v41 = vld [vmem:[#allocation10 + $0x8] sm:$0xff]  ;;  %v375_v44 = vld [vmem:[#allocation15] sm:$0xff]  ;;  %s473_s23 = sshll.u32 %s837_s3, 4  ;;  %s838_s2 = smov [#allocation20]   ;;  %s474_s23 = int_to_ptr.vmem [resolvable:$true] %s473_s23 }
  0x2f   :  { %v248_v6 = vsel %vm247_vm2, %v205_v5, 0.0  ;;  %v214_v7 = vperm.slane %v205_v5, 1  ;;  %v207_v8 = vperm.slane %v205_v5, 0  ;;  %v376_v42 = vld [vmem:[#allocation15 + $0x8] sm:$0xff]  ;;  %v314_v58 = vld [vmem:[#allocation12 + $0x18] sm:$0xff]  ;;  %v313_v59 = vld [vmem:[#allocation12 + $0x10] sm:$0xff] }
  0x30   :  { %249 = vadd.xlane.f32.xlu0 %v248_v6  ;;  %303 = vmatpush.msra.mxu0 %v281_v39  ;;  %v312_v60 = vld [vmem:[#allocation12 + $0x8] sm:$0xff]  ;;  %v407_v61 = vld [vmem:[#allocation16 + $0x18] sm:$0xff]  ;;  %v311_v62 = vld [vmem:[#allocation12] sm:$0xff]  ;;  %s484_s24 = sshll.u32 %s838_s2, 4  ;;  %s486_s27 = sshll.u32 %s1024_s16, 4  ;;  %s485_s24 = int_to_ptr.vmem [resolvable:$true] %s484_s24  ;;  %s487_s27 = int_to_ptr.hbm [resolvable:$true] %s486_s27 }
  0x31   :  { %v206_v33 = vld [vmem:[#allocation2] sm:$0x3]  ;;  %396 = vmatpush.msra.mxu3 %v377_v40  ;;  %334 = vmatpush.msra.mxu1 %v314_v58  ;;  %v406_v63 = vld [vmem:[#allocation16 + $0x10] sm:$0xff]  ;;  %v404_v1 = vld [vmem:[#allocation16] sm:$0xff] }
  0x32   :  { %v246_v10 = vld [vmem:[#allocation3] sm:$0x3]  ;;  %304 = vmatpush.msra.mxu0 %v280_v41  ;;  %v530_v2 = vld [vmem:[%s1012_s4] ss:$0 sm:$0xff] }
  0x33   :  { %397 = vmatpush.msra.mxu3 %v376_v42  ;;  %335 = vmatpush.msra.mxu1 %v313_v59  ;;  %v405_v0 = vld [vmem:[#allocation16 + $0x8] sm:$0xff] }
  0x34   :  { %305 = vmatpush.msra.mxu0 %v279_v43  ;;  %v531_v5 = vld [vmem:[%s1018_s10] ss:$0 sm:$0xff] }
  0x35   :  { %219 = vperm.xlu1 %527, %v214_v7   ;;  %398 = vmatpush.msra.mxu3 %v375_v44 }
  0x36   :  { %336 = vmatpush.msra.mxu1 %v312_v60  ;;  %427 = vmatpush.msrb.mxu0 %v407_v61 }
  0x38   :  { %337 = vmatpush.msra.mxu1 %v311_v62  ;;  %428 = vmatpush.msrb.mxu0 %v406_v63 }
  0x3a   :  { %429 = vmatpush.msrb.mxu0 %v405_v0 }
  0x3c   :  { %430 = vmatpush.msrb.mxu0 %v404_v1 }
  0x3d   :  { %528 = vset.pattern.permute.xlu1 %v836_v9 }
  0x44   :  { %212 = vperm.xlu0 %526, %v207_v8  }
  0x4c   :  { %529 = vset.pattern.permute.xlu0 %v836_v9 }
  0xa3   :  { %v250_v11 = vpop.xlane.xlu0 %249 }
  0xa4   :  { %v251_v12 = vadd.f32 %v250_v11, %v246_v10  ;;  %v346_v10 = vld [vmem:[#allocation13 + $0x18] sm:$0xff]  ;;  %v345_v11 = vld [vmem:[#allocation13 + $0x10] sm:$0xff] }
  0xa5   :  { %366 = vmatpush.msra.mxu2 %v346_v10 }
  0xa6   :  { %253 = vst.msk [vmem:[#allocation3] sm:$0x3] %vm196_vm1, %v251_v12  ;;  %v344_v12 = vld [vmem:[#allocation13 + $0x8] sm:$0xff] }
  0xa7   :  { %v220_v13 = vpop.permute.xlu1 %219  ;;  %367 = vmatpush.msra.mxu2 %v345_v11 }
  0xa8   :  { %v222_v15 = vmul.f32 %v220_v13, %v199_v14  ;;  %v439_v13 = vld [vmem:[#allocation18 + $0x18] sm:$0xff]  ;;  %v343_v14 = vld [vmem:[#allocation13] sm:$0xff] }
  0xa9   :  { %368 = vmatpush.msra.mxu2 %v344_v12  ;;  %459 = vmatpush.msrb.mxu1 %v439_v13 }
  0xaa   :  { %v231_v16 = vsel %vm223_vm6, %v222_v15, 0.0  ;;  %v438_v15 = vld [vmem:[#allocation18 + $0x10] sm:$0xff] }
  0xab   :  { %v232_v18 = vrot.slane %v231_v16, 4  ;;  %369 = vmatpush.msra.mxu2 %v343_v14  ;;  %460 = vmatpush.msrb.mxu1 %v438_v15 }
  0xad   :  { %v258_v17 = vld [vmem:[#allocation3] sm:$0x3]  ;;  %v233_v19 = vadd.f32 %v232_v18, %v231_v16  ;;  %v532_v18 = vld [vmem:[%s1014_s6] ss:$0 sm:$0xff] }
  0xae   :  { %261 = vperm.xlu1 %528, %v258_v17   ;;  %v437_v16 = vld [vmem:[#allocation18 + $0x8] sm:$0xff]  ;;  %v436_v17 = vld [vmem:[#allocation18] sm:$0xff] }
  0xaf   :  { %v234_v21 = vrot.slane %v233_v19, 2  ;;  %461 = vmatpush.msrb.mxu1 %v437_v16 }
  0xb1   :  { %v235_v25 = vadd.f32 %v234_v21, %v233_v19  ;;  %462 = vmatpush.msrb.mxu1 %v436_v17  ;;  %v533_v21 = vld [vmem:[%s1020_s12] ss:$0 sm:$0xff] }
  0xb3   :  { %v236_v28 = vrot.slane %v235_v25, 1 }
  0xb5   :  { %v237_v31 = vadd.f32 %v236_v28, %v235_v25 }
  0xb6   :  { %v213_v22 = vpop.permute.xlu0 %212 }
  0xb7   :  { %v221_v23 = vmul.f32 %v213_v22, %v198_v20 }
  0xb9   :  { %v224_v24 = vsel %vm223_vm6, %v221_v23, 0.0 }
  0xba   :  { %v225_v26 = vrot.slane %v224_v24, 4 }
  0xbc   :  { %v226_v27 = vadd.f32 %v225_v26, %v224_v24  ;;  %v534_v26 = vld [vmem:[%s1016_s8] ss:$0 sm:$0xff] }
  0xbe   :  { %v227_v29 = vrot.slane %v226_v27, 2 }
  0xc0   :  { %v228_v30 = vadd.f32 %v227_v29, %v226_v27  ;;  %v535_v27 = vld [vmem:[%s1022_s14] ss:$0 sm:$0xff] }
  0xc2   :  { %v229_v32 = vrot.slane %v228_v30, 1 }
  0xc4   :  { %v230_v34 = vadd.f32 %v229_v32, %v228_v30 }
  0xc6   :  { %v241_v35 = vsel %vm240_vm7, %v237_v31, %v230_v34 }
  0xc7   :  { %v243_v36 = vadd.f32 %v241_v35, %v206_v33 }
  0xc9   :  { %245 = vst.msk [vmem:[#allocation2] sm:$0x3] %vm194_vm0, %v243_v36 }
  0xd0   :  { %v257_v55 = vld [vmem:[#allocation2] sm:$0x3] }
 0x120   :  { %v262_v45 = vpop.permute.xlu1 %261 }
 0x121   :  { %536 = vrcp.f32 %v262_v45  ;;  %v275_v49 = vand.u32 2147483648, %v262_v45  ;;  %v273_v51 = vand.u32 2147483647, %v262_v45  ;;  %vm269_vm9 = vweird.f32 %v262_v45 }
 0x123   :  { %v276_v53 = vor.u32 1.1754944e-38, %v275_v49  ;;  %vm274_vm11 = vcmp.eq.f32.partialorder %v273_v51, 8.507059e+37 }
 0x127   :  { %v537_v46 = vpop.eup %536 }
 0x128   :  { %v265_v47 = vmul.f32 %v537_v46, %v262_v45  ;;  %vm270_vm8 = vweird.f32 %v537_v46 }
 0x129   :  { %vm271_vm10 = vmor %vm269_vm9, %vm270_vm8 }
 0x12a   :  { %v266_v48 = vsub.f32 1.0, %v265_v47 }
 0x12c   :  { %v267_v50 = vmul.f32 %v537_v46, %v266_v48 }
 0x12e   :  { %v268_v52 = vadd.f32 %v537_v46, %v267_v50 }
 0x130   :  { %v272_v54 = vsel %vm271_vm10, %v537_v46, %v268_v52 }
 0x131   :  { %v277_v56 = vsel %vm274_vm11, %v276_v53, %v272_v54 }
 0x132   :  { %v278_v57 = vmul.f32 %v277_v56, %v257_v55 }
 0x134   :  { %505 = vmatmul.msk.f32.vlgmr.msra.gmra.mxu0 %vm223_vm6, %v278_v57  ;;  %508 = vmatmul.msk.f32.vlgmr.msra.gmra.mxu3 %vm223_vm6, %v278_v57 }
 0x1b1   :  { %v307_v3 = vpop.f32.mrf.mxu0 }
 0x1b2   :  { %v308_v4 = vadd.f32 %v530_v2, %v307_v3 }
 0x1b4   :  { %538 = vtanh.f32 %v308_v4 }
 0x1b7   :  { %v400_v6 = vpop.f32.mrf.mxu3 }
 0x1b8   :  { %v401_v7 = vadd.f32 %v531_v5, %v400_v6 }
 0x1ba   :  { %v539_v8 = vpop.eup %538  ;;  %540 = vtanh.f32 %v401_v7 }
 0x1bb   :  { %506 = vmatmul.msk.f32.vlgmr.msra.gmra.mxu1 %vm223_vm6, %v539_v8 }
 0x1c0   :  { %v541_v9 = vpop.eup %540 }
 0x1c1   :  { %509 = vmatmul.msk.f32.vlgmr.msrb.gmra.mxu0 %vm223_vm6, %v541_v9 }
 0x238   :  { %v339_v19 = vpop.f32.mrf.mxu1 }
 0x239   :  { %v340_v20 = vadd.f32 %v532_v18, %v339_v19 }
 0x23b   :  { %542 = vtanh.f32 %v340_v20 }
 0x23e   :  { %v432_v22 = vpop.f32.mrf.mxu0 }
 0x23f   :  { %v433_v23 = vadd.f32 %v533_v21, %v432_v22 }
 0x241   :  { %v543_v24 = vpop.eup %542  ;;  %544 = vtanh.f32 %v433_v23 }
 0x242   :  { %507 = vmatmul.msk.f32.vlgmr.msra.gmra.mxu2 %vm223_vm6, %v543_v24 }
 0x247   :  { %v545_v25 = vpop.eup %544 }
 0x248   :  { %510 = vmatmul.msk.f32.vlgmr.msrb.gmra.mxu1 %vm223_vm6, %v545_v25 }
 0x2c5   :  { %v371_v28 = vpop.f32.mrf.mxu2  ;;  %v464_v29 = vpop.f32.mrf.mxu1 }
 0x2c6   :  { %v372_v30 = vadd.f32 %v534_v26, %v371_v28  ;;  %v465_v31 = vadd.f32 %v535_v27, %v464_v29 }
 0x2c8   :  { %374 = vst [vmem:[#allocation19] sm:$0x3] %v372_v30 }
 0x2c9   :  { %467 = vst [vmem:[#allocation20] sm:$0x3] %v465_v31  ;;  %478 = dma.vmem_to_hbm [thread:$0]  %s474_s23, 32, %s476_s7, [#allocation6]  }
 0x2ca   :  { %489 = dma.vmem_to_hbm [thread:$0]  %s485_s24, 32, %s487_s27, [#allocation21]  }
 0x2cb   :  { %820 = dma.done.wait [#allocation6], 32  }
 0x2cc   :  { %821 = vsyncadd [#allocation6], 4294967264 }
 0x2cd   :  { %822 = dma.done.wait [#allocation21], 32  }
 0x2ce   :  { %823 = vsyncadd [#allocation21], 4294967264 }
 0x2cf   :  { %498 = vsyncpa [#allocation5], 1 }
 0x2d0   :  { %499 = vsyncpa [#allocation8], 1 }
 0x2d1   :  { %500 = vsyncpa [#allocation11], 1 }
 0x2d2   :  { %501 = vsyncpa [#allocation14], 1 }
 0x2d3   :  { %502 = vsyncpa [#allocation17], 1 }
 0x2d4   :  { %503 = vsyncpa [#allocation6], 1 }
 0x2d5   :  { %504 = vsyncpa [#allocation21], 1 }

</bundles_post_ra>
